<compile_context>
chip_gen: v6e
topology: v6e:2x2x1
jax: 0.10.0
libtpu: 0.0.40
codegen_flags: <defaults>
</compile_context>

<pallas_src>
import functools

import jax
import jax.numpy as jnp
from jax.experimental import pallas as pl
from jax.experimental.pallas import tpu as pltpu


def _round_up(a: int, b: int) -> int:
    return ((a + b - 1) // b) * b


def _mask_k_remainder(x, w, k_rem, tk):
    """Zero K lanes past the true K on the last (partial) K tile.

    Both operands are masked: out-of-bounds block reads are unspecified and
    could be NaN/Inf, and 0 * NaN == NaN would poison the accumulation.
    """
    k = pl.program_id(2)
    last = pl.num_programs(2) - 1
    limit = jnp.where(k == last, k_rem, tk)
    x = jnp.where(jax.lax.broadcasted_iota(jnp.int32, x.shape, 1) < limit,
                  x, jnp.zeros_like(x))
    w = jnp.where(jax.lax.broadcasted_iota(jnp.int32, w.shape, 0) < limit,
                  w, jnp.zeros_like(w))
    return x, w


def fc_kernel_direct(x_ref, w_ref, b_ref, o_ref, *, k_rem, tk):
    """f32 output: accumulate straight into the resident output block."""
    k = pl.program_id(2)

    @pl.when(k == 0)
    def _init():
        o_ref[...] = jnp.broadcast_to(b_ref[...], o_ref.shape).astype(o_ref.dtype)

    x = x_ref[...]
    w = w_ref[...]
    if k_rem:
        x, w = _mask_k_remainder(x, w, k_rem, tk)
    o_ref[...] += jnp.dot(x, w, preferred_element_type=jnp.float32)


def fc_kernel_acc(x_ref, w_ref, b_ref, o_ref, acc_ref, *, k_rem, tk):
    """Narrow output dtype: f32 scratch accumulator, cast on the last K step."""
    k = pl.program_id(2)

    @pl.when(k == 0)
    def _init():
        acc_ref[...] = jnp.zeros_like(acc_ref)

    x = x_ref[...]
    w = w_ref[...]
    if k_rem:
        x, w = _mask_k_remainder(x, w, k_rem, tk)
    acc_ref[...] += jnp.dot(x, w, preferred_element_type=jnp.float32)

    @pl.when(k == pl.num_programs(2) - 1)
    def _finalize():
        o_ref[...] = (acc_ref[...] + b_ref[...]).astype(o_ref.dtype)


def prepare_fc_params(weight, bias, *, compute_dtype=jnp.bfloat16):
    """One-time parameter prep (cache the result and reuse across calls).

    weight: (out_ch, in_ch) PyTorch nn.Linear layout; bias: (out_ch,).
    Returns (w_t, b2, out_ch): w_t is (in_ch, out_ch_padded) in compute_dtype,
    b2 is (1, out_ch_padded) float32.
    """
    N, K = weight.shape
    Np = max(128, _round_up(N, 128))                 # lane-dense output stores
    w_t = weight.T.astype(compute_dtype)             # (K, N): no per-tile vxpose
    b = bias.astype(jnp.float32)
    if Np != N:
        w_t = jnp.pad(w_t, ((0, 0), (0, Np - N)))
        b = jnp.pad(b, (0, Np - N))
    return w_t, b.reshape(1, Np), N


def fc_forward(x, w_t, b2, *, tm=256, tn=512, tk=1024, out_dtype=None):
    """y_padded = x @ w_t + b2 with f32 accumulation on the MXU.

    x:  (M, in_ch); w_t: (in_ch, out_ch_padded); b2: (1, out_ch_padded) f32.
    Returns (M, out_ch_padded) in out_dtype (default: x.dtype).
    """
    M, K = x.shape
    K2, Np = w_t.shape
    assert K == K2, (K, K2)
    out_dtype = jnp.dtype(out_dtype if out_dtype is not None else x.dtype)
    compute_dtype = w_t.dtype

    # Pre-cast activations in HBM (cheap vs. the weight stream) so the kernel
    # never spends VPU cycles casting after the DMA.
    x = x.astype(compute_dtype)

    # Clamp tiles to the problem (full-dim blocks satisfy the (8,128) rule).
    tm = min(tm, M)
    tn = min(tn, Np)
    tk = min(tk, K)

    # v7x has 2 TensorCores: expose >= 2 parallel (i, j) iterations by
    # splitting N when the parallel grid would otherwise be 1x1.
    if pl.cdiv(M, tm) * pl.cdiv(Np, tn) < 2 and Np >= 256:
        tn = max(128, _round_up(Np // 2, 128))

    k_rem = K % tk
    grid = (pl.cdiv(M, tm), pl.cdiv(Np, tn), pl.cdiv(K, tk))
    gi, gj, gk = grid

    use_scratch = out_dtype != jnp.float32
    if use_scratch:
        kernel = functools.partial(fc_kernel_acc, k_rem=k_rem, tk=tk)
        scratch_shapes = [pltpu.VMEM((tm, tn), jnp.float32)]
    else:
        kernel = functools.partial(fc_kernel_direct, k_rem=k_rem, tk=tk)
        scratch_shapes = []

    # VMEM budget: double-buffered tiles (+ f32 accumulator if used), leaving
    # headroom for Mosaic internal scratch (v7x only has 64 MiB physical VMEM).
    c_bytes = jnp.dtype(compute_dtype).itemsize
    o_bytes = out_dtype.itemsize
    need = 2 * (tm * tk * c_bytes + tk * tn * c_bytes + tn * 4 + tm * tn * o_bytes)
    if use_scratch:
        need += tm * tn * 4
    try:
        total_vmem = int(pltpu.get_tpu_info().vmem_capacity_bytes)
    except Exception:  # conservative fallback sized for v7x
        total_vmem = 64 * 1024 * 1024
    vmem_cap = (total_vmem * 3) // 4          # ~48 MiB on v7x, ~96 MiB on v5e/v6e
    vmem_limit = int(min(max(2 * need, 32 * 1024 * 1024), vmem_cap))
    vmem_limit = max(vmem_limit, need)

    # HBM traffic including re-reads: x streamed once per N tile, w once per
    # M tile; bias per M tile; output written once.
    cost = pl.CostEstimate(
        flops=2 * M * Np * K,
        transcendentals=0,
        bytes_accessed=(M * K * c_bytes * gj
                        + K * Np * c_bytes * gi
                        + Np * 4 * gi
                        + M * Np * o_bytes),
    )

    return pl.pallas_call(
        kernel,
        out_shape=jax.ShapeDtypeStruct((M, Np), out_dtype),
        grid_spec=pltpu.PrefetchScalarGridSpec(
            num_scalar_prefetch=0,
            grid=grid,
            in_specs=[
                pl.BlockSpec((tm, tk), lambda i, j, k: (i, k)),  # x (M, K) slab
                # TODO(synk): consider pipeline_mode=pl.Buffered(3) on the
                # weight stream if v7x profiling shows exposed DMA latency.
                pl.BlockSpec((tk, tn), lambda i, j, k: (k, j)),  # w_t (K, N) slab
                pl.BlockSpec((1, tn), lambda i, j, k: (0, j)),   # bias slab
            ],
            out_specs=pl.BlockSpec((tm, tn), lambda i, j, k: (i, j)),
            scratch_shapes=scratch_shapes,
        ),
        compiler_params=pltpu.CompilerParams(
            dimension_semantics=("parallel", "parallel", "arbitrary"),
            vmem_limit_bytes=vmem_limit,
        ),
        cost_estimate=cost,
    )(x, w_t, b2)


def fc_apply(x, weight, bias, *, compute_dtype=jnp.bfloat16, **tile_kwargs):
    """nn.Linear semantics from PyTorch-layout params: y = x @ weight.T + bias.

    (In real usage call prepare_fc_params once and reuse w_t / b2 across many
    forward calls; this convenience wrapper re-prepares for test simplicity.)
    """
    w_t, b2, n_out = prepare_fc_params(weight, bias, compute_dtype=compute_dtype)
    y = fc_forward(x, w_t, b2, **tile_kwargs)
    return y if y.shape[1] == n_out else y[:, :n_out]


if __name__ == "__main__":
    key = jax.random.PRNGKey(0)

    # --- Case 1: tiny layer (nn.Linear(32, 64)), f32 compute, tight check ---
    M, in_ch, out_ch = 16, 32, 64
    kx, kw, kb = jax.random.split(key, 3)
    bound = 1.0 / (in_ch ** 0.5)
    x = jax.random.normal(kx, (M, in_ch), dtype=jnp.float32)
    weight = jax.random.uniform(kw, (out_ch, in_ch), jnp.float32, -bound, bound)
    bias = jax.random.uniform(kb, (out_ch,), jnp.float32, -bound, bound)
    y_ref = x @ weight.T + bias

    y = jax.block_until_ready(fc_apply(x, weight, bias, compute_dtype=jnp.float32))
    assert y.shape == (M, out_ch)
    assert jnp.allclose(y, y_ref, atol=2e-5, rtol=2e-5)

    # bf16 weights/activations stored in HBM (default), f32 accumulation.
    y_bf16 = jax.block_until_ready(fc_apply(x, weight, bias))
    assert y_bf16.dtype == jnp.float32
    assert jnp.allclose(y_bf16, y_ref, atol=1e-1, rtol=1e-1)

    # --- Case 2: multi-tile grid with K-axis accumulation (f32, tight) ------
    M2, in2, out2 = 16, 256, 128
    k2x, k2w, k2b = jax.random.split(jax.random.PRNGKey(1), 3)
    bound2 = 1.0 / (in2 ** 0.5)
    x2 = jax.random.normal(k2x, (M2, in2), dtype=jnp.float32)
    w2 = jax.random.uniform(k2w, (out2, in2), jnp.float32, -bound2, bound2)
    b2 = jax.random.uniform(k2b, (out2,), jnp.float32, -bound2, bound2)
    y2_ref = x2 @ w2.T + b2

    y2 = jax.block_until_ready(
        fc_apply(x2, w2, b2, compute_dtype=jnp.float32, tm=8, tn=128, tk=128))
    assert jnp.allclose(y2, y2_ref, atol=1e-4, rtol=1e-4)

    # --- Case 3: K remainder masking + padded (non-128) out_ch --------------
    M3, in3, out3 = 32, 320, 192          # K % tk != 0, N % 128 != 0
    k3x, k3w, k3b = jax.random.split(jax.random.PRNGKey(2), 3)
    bound3 = 1.0 / (in3 ** 0.5)
    x3 = jax.random.normal(k3x, (M3, in3), dtype=jnp.float32)
    w3 = jax.random.uniform(k3w, (out3, in3), jnp.float32, -bound3, bound3)
    b3 = jax.random.uniform(k3b, (out3,), jnp.float32, -bound3, bound3)
    y3_ref = x3 @ w3.T + b3

    y3 = jax.block_until_ready(
        fc_apply(x3, w3, b3, compute_dtype=jnp.float32, tm=32, tn=128, tk=256))
    assert y3.shape == (M3, out3)
    assert jnp.allclose(y3, y3_ref, atol=2e-4, rtol=2e-4)

    y3_bf16 = jax.block_until_ready(fc_apply(x3, w3, b3, tm=32, tn=128, tk=256))
    assert jnp.allclose(y3_bf16, y3_ref, atol=1e-1, rtol=1e-1)

    # --- Case 4: bf16 in -> bf16 out (exercises the scratch-accumulator path)
    x4 = x2.astype(jnp.bfloat16)
    y4 = jax.block_until_ready(fc_apply(x4, w2, b2, tm=8, tn=128, tk=128))
    assert y4.dtype == jnp.bfloat16
    assert jnp.allclose(y4.astype(jnp.float32), y2_ref, atol=1.5e-1, rtol=1.5e-1)

    print("KERNEL_OK")
</pallas_src>

<mosaic_0001>
module attributes {stable_mosaic.version = 11 : i64} {
  func.func @fc_kernel_direct(%arg0: i32, %arg1: i32, %arg2: i32, %arg3: memref<16x32xf32, #tpu.memory_space<vmem>>, %arg4: memref<32x128xf32, #tpu.memory_space<vmem>>, %arg5: memref<1x128xf32, #tpu.memory_space<vmem>>, %arg6: memref<16x128xf32, #tpu.memory_space<vmem>>) attributes {dimension_semantics = [#tpu.dimension_semantics<parallel>, #tpu.dimension_semantics<parallel>, #tpu.dimension_semantics<arbitrary>], iteration_bounds = array<i64: 1, 1, 1>, scalar_prefetch = 0 : i64, scratch_operands = 0 : i64, tpu.core_type = #tpu.core_type<tc>, window_params = [{transform_indices = @transform_0, window_bounds = array<i64: 16, 32>}, {transform_indices = @transform_1, window_bounds = array<i64: 32, 128>}, {transform_indices = @transform_2, window_bounds = array<i64: 1, 128>}, {transform_indices = @transform_3, window_bounds = array<i64: 16, 128>}]} {
    %c0_i32 = arith.constant 0 : i32
    %0 = arith.cmpi eq, %arg2, %c0_i32 : i32
    %1 = arith.extui %0 : i1 to i32
    %c0_i32_0 = arith.constant 0 : i32
    %2 = arith.cmpi ne, %1, %c0_i32_0 : i32
    scf.if %2 {
      %c0_8 = arith.constant 0 : index
      %c0_9 = arith.constant 0 : index
      %9 = vector.load %arg5[%c0_8, %c0_9] : memref<1x128xf32, #tpu.memory_space<vmem>>, vector<1x128xf32>
      %10 = vector.shape_cast %9 : vector<1x128xf32> to vector<1x128xf32>
      %11 = vector.broadcast %10 : vector<1x128xf32> to vector<16x128xf32>
      %c0_10 = arith.constant 0 : index
      %c0_11 = arith.constant 0 : index
      %12 = vector.load %arg6[%c0_10, %c0_11] : memref<16x128xf32, #tpu.memory_space<vmem>>, vector<16x128xf32>
      tpu.vector_store %arg6[%c0_10, %c0_11], %11 {strides = array<i32>} : memref<16x128xf32, #tpu.memory_space<vmem>>, vector<16x128xf32>,
    } else {
    }
    %c0 = arith.constant 0 : index
    %c0_1 = arith.constant 0 : index
    %3 = vector.load %arg3[%c0, %c0_1] : memref<16x32xf32, #tpu.memory_space<vmem>>, vector<16x32xf32>
    %c0_2 = arith.constant 0 : index
    %c0_3 = arith.constant 0 : index
    %4 = vector.load %arg4[%c0_2, %c0_3] : memref<32x128xf32, #tpu.memory_space<vmem>>, vector<32x128xf32>
    %c0_4 = arith.constant 0 : index
    %c0_5 = arith.constant 0 : index
    %5 = vector.load %arg6[%c0_4, %c0_5] : memref<16x128xf32, #tpu.memory_space<vmem>>, vector<16x128xf32>
    %cst = arith.constant dense<0.000000e+00> : vector<16x128xf32>
    %6 = tpu.matmul %3, %4, %cst {dimension_numbers = #tpu.dot_dimension_numbers<[1], [0], [0], [1], [0, 0, 1, 1], [], []>} : vector<16x32xf32>, vector<32x128xf32>, vector<16x128xf32> -> vector<16x128xf32>
    %7 = arith.addf %5, %6 : vector<16x128xf32>
    %c0_6 = arith.constant 0 : index
    %c0_7 = arith.constant 0 : index
    %8 = vector.load %arg6[%c0_6, %c0_7] : memref<16x128xf32, #tpu.memory_space<vmem>>, vector<16x128xf32>
    tpu.vector_store %arg6[%c0_6, %c0_7], %7 {strides = array<i32>} : memref<16x128xf32, #tpu.memory_space<vmem>>, vector<16x128xf32>,
    return
  }
  func.func @transform_0(%arg0: i32, %arg1: i32, %arg2: i32) -> (i32, i32) {
    %c0_i32 = arith.constant 0 : i32
    return %arg0, %arg2 : i32, i32
  }
  func.func @transform_1(%arg0: i32, %arg1: i32, %arg2: i32) -> (i32, i32) {
    %c0_i32 = arith.constant 0 : i32
    return %arg2, %arg1 : i32, i32
  }
  func.func @transform_2(%arg0: i32, %arg1: i32, %arg2: i32) -> (i32, i32) {
    %c0_i32 = arith.constant 0 : i32
    %c0_i32_0 = arith.constant 0 : i32
    return %c0_i32, %arg1 : i32, i32
  }
  func.func @transform_3(%arg0: i32, %arg1: i32, %arg2: i32) -> (i32, i32) {
    %c0_i32 = arith.constant 0 : i32
    return %arg0, %arg1 : i32, i32
  }
}

</mosaic_0001>

<bundles_post_ra>
// kernel: tpu_custom_call.1
= control target key start
LH: loop header
LB: loop body
LE: loop exit
PB: predicated region body
PF: predicated region fallthrough
CT: control target
= control target key end

     0   :  { %8 = vsyncpa [#allocation3], 0  ;;  %s307_s0 = inlined_call_operand.hbm [shape: f32[16,32], index: 0, kind: input, shape index: {}]   ;;  %s308_s1 = inlined_call_operand.hbm [shape: f32[32,128], index: 1, kind: input, shape index: {}]   ;;  %s309_s2 = inlined_call_operand.vmem [shape: f32[1,128], index: 2, kind: input, shape index: {}]   ;;  %s310_s3 = inlined_call_operand.hbm [shape: f32[16,128], index: 3, kind: output, shape index: {}]  }
   0x1   :  { %9 = vsyncpa [#allocation6], 0 }
   0x2   :  { %10 = vsyncpa [#allocation4], 0  ;;  %s259_s12 = smov [#allocation2]  }
   0x3   :  { %s16_s13 = sshll.u32 %s259_s12, 4  ;;  %s17_s13 = int_to_ptr.vmem [resolvable:$true] %s16_s13 }
   0x4   :  { %s201_s14 = scalar_lea.vmem %s17_s13, 256  ;;  %p206_p1 = scmp.lt.s32.totalorder %s17_s13, %s17_s13 }
   0x5   :  { %p202_p0 = scmp.ne.s32.totalorder %s17_s13, %s201_s14  ;;  %p207_p2 = scmp.lt.s32.totalorder %s201_s14, %s201_s14 }
   0x7   :  { %p208_p3 = por %p207_p2, %p206_p1 }
   0x9   :  { %p209_p4 = pnand %p208_p3, %p202_p0 }
   0xb   :  { %212 = shalt.err (!%p209_p4)
}
   0xc   :  { %s260_s15 = smov 128   ;;  %s261_s16 = smov 8  }
   0xd   :  { %22 = dma.hbm_to_vmem [thread:$0]  %s307_s0, 256, %s17_s13, [#allocation3], %s260_s15, %s260_s15, %s261_s16  }
   0xe   :  { %s262_s19 = smov [#allocation5]  }
   0xf   :  { %s28_s20 = sshll.u32 %s262_s19, 4  ;;  %s29_s20 = int_to_ptr.vmem [resolvable:$true] %s28_s20 }
  0x10   :  { %s221_s21 = scalar_lea.vmem %s29_s20, 512  ;;  %p226_p6 = scmp.lt.s32.totalorder %s29_s20, %s29_s20 }
  0x11   :  { %p222_p5 = scmp.ne.s32.totalorder %s29_s20, %s221_s21  ;;  %p227_p7 = scmp.lt.s32.totalorder %s221_s21, %s221_s21 }
  0x13   :  { %p228_p8 = por %p227_p7, %p226_p6 }
  0x15   :  { %p229_p9 = pnand %p228_p8, %p222_p5 }
  0x17   :  { %232 = shalt.err (!%p229_p9)
}
  0x18   :  { %34 = dma.hbm_to_vmem [thread:$0]  %s308_s1, 512, %s29_s20, [#allocation6], %s260_s15, %s260_s15, %s261_s16  }
  0x19   :  { %253 = dma.done.wait [#allocation3], 256  }
  0x1a   :  { %254 = vsyncadd [#allocation3], 4294967040 }
  0x1b   :  { %255 = dma.done.wait [#allocation6], 512  }
  0x1c   :  { %256 = vsyncadd [#allocation6], 4294966784  ;;  %vm64_vm0 = vcmask 261120   ;;  %v61_v0 = vld [vmem:[#allocation5 + $0x18] sm:$0xff]  ;;  %v60_v1 = vld [vmem:[#allocation5 + $0x10] sm:$0xff]  ;;  %s263_s24 = smov [#allocation7]  }
  0x1d   :  { %177 = vmatprep.subr.mxu0 %v61_v0  ;;  %v56_v2 = vld [vmem:[#allocation2] sm:$0xff]  ;;  %v59_v3 = vld [vmem:[#allocation5 + $0x8] sm:$0xff]  ;;  %v58_v4 = vld [vmem:[#allocation5] sm:$0xff]  ;;  %s155_s25 = sshll.u32 %s263_s24, 4  ;;  %s156_s25 = int_to_ptr.vmem [resolvable:$true] %s155_s25 }
  0x1e   :  { %178 = vmatpush3.msra.mxu0 %v61_v0  ;;  %185 = vmatprep.mubr.msk.f32.mxu0 %vm64_vm0, %v56_v2  ;;  %v57_v5 = vld [vmem:[#allocation2 + $0x8] sm:$0xff]  ;;  %v168_v6 = vld [vmem:[%s309_s2] ss:$0 sm:$0xff]  ;;  %s233_s26 = scalar_lea.vmem %s156_s25, 256  ;;  %p238_p11 = scmp.lt.s32.totalorder %s156_s25, %s156_s25 }
  0x1f   :  { %179 = vmatprep.subr.mxu0 %v60_v1  ;;  %p234_p10 = scmp.ne.s32.totalorder %s156_s25, %s233_s26  ;;  %p239_p12 = scmp.lt.s32.totalorder %s233_s26, %s233_s26 }
  0x20   :  { %180 = vmatpush3.msra.mxu0 %v60_v1 }
  0x21   :  { %181 = vmatprep.subr.mxu0 %v59_v3  ;;  %p240_p13 = por %p239_p12, %p238_p11 }
  0x22   :  { %182 = vmatpush3.msra.mxu0 %v59_v3 }
  0x23   :  { %183 = vmatprep.subr.mxu0 %v58_v4  ;;  %p241_p0 = pnand %p240_p13, %p234_p10 }
  0x24   :  { %184 = vmatpush3.msra.mxu0 %v58_v4 }
  0x25   :  { %186 = vmatmul.mubr.msk.f32.vlgmr.msra.gmra.mxu0 %vm64_vm0, %v57_v5 }
  0xe5   :  { %v187_v7 = vpop.f32.mrf.mxu0 }
  0xe6   :  { %v147_v8 = vadd.f32 %v187_v7, %v168_v6 }
  0xe7   :  { %v137_v9 = vpop.f32.mrf.mxu0 }
  0xe8   :  { %149 = vst [vmem:[#allocation7 + $0x8] sm:$0xff] %v147_v8  ;;  %v146_v10 = vadd.f32 %v168_v6, %v137_v9 }
  0xea   :  { %148 = vst [vmem:[#allocation7] sm:$0xff] %v146_v10 }
  0xeb   :  { %244 = shalt.err (!%p241_p0)
}
  0xec   :  { %161 = dma.vmem_to_hbm [thread:$0]  %s156_s25, 256, %s310_s3, [#allocation4], %s260_s15, %s260_s15, %s261_s16  }
  0xed   :  { %257 = dma.done.wait [#allocation4], 256  }
  0xee   :  { %258 = vsyncadd [#allocation4], 4294967040 }
  0xef   :  { %165 = vsyncpa [#allocation3], 1 }
  0xf0   :  { %166 = vsyncpa [#allocation6], 1 }
  0xf1   :  { %167 = vsyncpa [#allocation4], 1 }

</bundles_post_ra>
